<compile_context>
chip_gen: v5e
topology: v5e:2x2
jax: 0.10.0
libtpu: 0.0.40
codegen_flags: <defaults>
</compile_context>

<pallas_src>
import jax
import jax.numpy as jnp
from jax.experimental import pallas as pl
from jax.experimental.pallas import tpu as pltpu

SEQ = 200        # demo sequence length (not a TILE_S multiple -> exercises padding)
HIDDEN = 128     # hidden size of the synthetic BERT model (lane-dense output)
VOCAB = 500      # vocab size of the synthetic BERT model (padded to TILE_V multiple)
MAX_POS = 256    # max position embeddings
TILE_S = 128     # sequence tile (MXU-row sized, sublane-aligned)
TILE_V = 256     # vocab reduction tile (2 steps for the demo -> exercises accumulation)
EPS = 1e-12      # BERT LayerNorm eps


def bert_embedding_kernel(ids_ref, wemb_ref, pemb_ref, g_ref, b_ref, o_ref, acc_ref):
    v = pl.program_id(1)
    tile_s = ids_ref.shape[0]
    tile_v = wemb_ref.shape[0]

    # Seed the accumulator with the position(+type) embedding for this seq tile.
    @pl.when(v == 0)
    def _init():
        acc_ref[...] = pemb_ref[...]

    # Token-embedding gather for this vocab tile as a one-hot MXU matmul.
    ids = ids_ref[...]                                                   # (tile_s, 1) int32
    iota = jax.lax.broadcasted_iota(jnp.int32, (tile_s, tile_v), 1) + v * tile_v
    one_hot = (iota == ids).astype(jnp.float32)                          # (tile_s, tile_v)
    acc_ref[...] += jnp.dot(one_hot, wemb_ref[...],
                            preferred_element_type=jnp.float32)          # (tile_s, hidden)

    # LayerNorm epilogue, once per seq tile at the last vocab step.
    @pl.when(v == pl.num_programs(1) - 1)
    def _finalize():
        x = acc_ref[...]
        mean = jnp.mean(x, axis=-1, keepdims=True)
        var = jnp.mean((x - mean) ** 2, axis=-1, keepdims=True)
        xn = (x - mean) * jax.lax.rsqrt(var + EPS)
        o_ref[...] = (xn * g_ref[...] + b_ref[...]).astype(o_ref.dtype)


def bert_embedding(batch_seqs, word_emb, pos_emb, type_emb, gamma, beta):
    """Equivalent of BertEmbedding.forward: model(batch_seqs.unsqueeze(0))[0].squeeze(0)."""
    seq = batch_seqs.shape[0]
    vocab, hidden = word_emb.shape
    assert seq <= pos_emb.shape[0], "sequence longer than max position embeddings"

    seq_tiles = pl.cdiv(seq, TILE_S)
    seq_pad = seq_tiles * TILE_S
    voc_tiles = pl.cdiv(vocab, TILE_V)
    voc_pad = voc_tiles * TILE_V

    # glue: pad seq to a TILE_S multiple (padded rows are sliced off below),
    # pad vocab to a TILE_V multiple (padded rows are never selected by the
    # one-hot), fold the token-type-0 embedding into the position table.
    ids2d = batch_seqs.astype(jnp.int32).reshape(seq, 1)
    ids2d = jnp.pad(ids2d, ((0, seq_pad - seq), (0, 0)))
    pos = jnp.pad(pos_emb[:seq] + type_emb, ((0, seq_pad - seq), (0, 0)))
    wemb = jnp.pad(word_emb, ((0, voc_pad - vocab), (0, 0)))

    out = pl.pallas_call(
        bert_embedding_kernel,
        out_shape=jax.ShapeDtypeStruct((seq_pad, hidden), jnp.float32),
        grid_spec=pltpu.PrefetchScalarGridSpec(
            num_scalar_prefetch=0,
            grid=(seq_tiles, voc_tiles),
            in_specs=[
                pl.BlockSpec((TILE_S, 1), lambda i, v: (i, 0)),        # token ids tile
                pl.BlockSpec((TILE_V, hidden), lambda i, v: (v, 0)),   # word-emb vocab tile (pipelined)
                pl.BlockSpec((TILE_S, hidden), lambda i, v: (i, 0)),   # pos(+type) embeddings tile
                pl.BlockSpec((1, hidden), lambda i, v: (0, 0)),        # LayerNorm gamma
                pl.BlockSpec((1, hidden), lambda i, v: (0, 0)),        # LayerNorm beta
            ],
            out_specs=pl.BlockSpec((TILE_S, hidden), lambda i, v: (i, 0)),
            scratch_shapes=[pltpu.VMEM((TILE_S, hidden), jnp.float32)],
        ),
        compiler_params=pltpu.CompilerParams(
            dimension_semantics=("parallel", "arbitrary")),
    )(ids2d, wemb, pos, gamma, beta)
    return out[:seq]


def _reference(batch_seqs, word_emb, pos_emb, type_emb, gamma, beta):
    seq = batch_seqs.shape[0]
    x = word_emb[batch_seqs] + pos_emb[:seq] + type_emb
    mean = jnp.mean(x, axis=-1, keepdims=True)
    var = jnp.mean((x - mean) ** 2, axis=-1, keepdims=True)
    return (x - mean) * jax.lax.rsqrt(var + EPS) * gamma + beta


if __name__ == "__main__":
    key = jax.random.PRNGKey(0)
    k_ids, k_w, k_p, k_t, k_g, k_b = jax.random.split(key, 6)

    # deterministic synthetic parameters (shapes implied by a BERT embedding layer)
    batch_seqs = jax.random.randint(k_ids, (SEQ,), 0, VOCAB, dtype=jnp.int32)
    word_emb = jax.random.normal(k_w, (VOCAB, HIDDEN), jnp.float32) * 0.02
    pos_emb = jax.random.normal(k_p, (MAX_POS, HIDDEN), jnp.float32) * 0.02
    type_emb = jax.random.normal(k_t, (1, HIDDEN), jnp.float32) * 0.02
    gamma = 1.0 + 0.1 * jax.random.normal(k_g, (1, HIDDEN), jnp.float32)
    beta = 0.1 * jax.random.normal(k_b, (1, HIDDEN), jnp.float32)

    out = bert_embedding(batch_seqs, word_emb, pos_emb, type_emb, gamma, beta)
    out = jax.block_until_ready(out)

    ref = _reference(batch_seqs, word_emb, pos_emb, type_emb, gamma, beta)
    assert out.shape == (SEQ, HIDDEN)
    assert jnp.allclose(out, ref, atol=1e-5, rtol=1e-5)
    print("KERNEL_OK")
</pallas_src>

<mosaic_0001>
module attributes {stable_mosaic.version = 11 : i64} {
  func.func @bert_embedding_kernel(%arg0: i32, %arg1: i32, %arg2: memref<128x1xi32, #tpu.memory_space<vmem>>, %arg3: memref<256x128xf32, #tpu.memory_space<vmem>>, %arg4: memref<128x128xf32, #tpu.memory_space<vmem>>, %arg5: memref<1x128xf32, #tpu.memory_space<vmem>>, %arg6: memref<1x128xf32, #tpu.memory_space<vmem>>, %arg7: memref<128x128xf32, #tpu.memory_space<vmem>>, %arg8: memref<128x128xf32, #tpu.memory_space<vmem>>) attributes {dimension_semantics = [#tpu.dimension_semantics<parallel>, #tpu.dimension_semantics<arbitrary>], iteration_bounds = array<i64: 2, 2>, scalar_prefetch = 0 : i64, scratch_operands = 1 : i64, tpu.core_type = #tpu.core_type<tc>, window_params = [{transform_indices = @transform_0, window_bounds = array<i64: 128, 1>}, {transform_indices = @transform_1, window_bounds = array<i64: 256, 128>}, {transform_indices = @transform_2, window_bounds = array<i64: 128, 128>}, {pipeline_mode = #tpu.pipeline_mode<synchronous>, transform_indices = @transform_3, window_bounds = array<i64: 1, 128>}, {pipeline_mode = #tpu.pipeline_mode<synchronous>, transform_indices = @transform_4, window_bounds = array<i64: 1, 128>}, {transform_indices = @transform_5, window_bounds = array<i64: 128, 128>}]} {
    %c0_i32 = arith.constant 0 : i32
    %0 = arith.cmpi eq, %arg1, %c0_i32 : i32
    %1 = arith.extui %0 : i1 to i32
    %c0_i32_0 = arith.constant 0 : i32
    %2 = arith.cmpi ne, %1, %c0_i32_0 : i32
    scf.if %2 {
      %c0_9 = arith.constant 0 : index
      %c0_10 = arith.constant 0 : index
      %20 = vector.load %arg4[%c0_9, %c0_10] : memref<128x128xf32, #tpu.memory_space<vmem>>, vector<128x128xf32>
      %c0_11 = arith.constant 0 : index
      %c0_12 = arith.constant 0 : index
      %21 = vector.load %arg8[%c0_11, %c0_12] : memref<128x128xf32, #tpu.memory_space<vmem>>, vector<128x128xf32>
      tpu.vector_store %arg8[%c0_11, %c0_12], %20 {strides = array<i32>} : memref<128x128xf32, #tpu.memory_space<vmem>>, vector<128x128xf32>,
    } else {
    }
    %c0 = arith.constant 0 : index
    %c0_1 = arith.constant 0 : index
    %3 = vector.load %arg2[%c0, %c0_1] : memref<128x1xi32, #tpu.memory_space<vmem>>, vector<128x1xi32>
    %4 = tpu.iota {dimensions = array<i32: 1>} : vector<128x256xi32>
    %c256_i32 = arith.constant 256 : i32
    %5 = arith.muli %arg1, %c256_i32 : i32
    %6 = vector.broadcast %5 : i32 to vector<128x256xi32>
    %7 = arith.addi %4, %6 : vector<128x256xi32>
    %8 = vector.broadcast %3 : vector<128x1xi32> to vector<128x256xi32>
    %9 = arith.cmpi eq, %7, %8 : vector<128x256xi32>
    %10 = arith.extui %9 : vector<128x256xi1> to vector<128x256xi32>
    %11 = arith.sitofp %10 : vector<128x256xi32> to vector<128x256xf32>
    %c0_2 = arith.constant 0 : index
    %c0_3 = arith.constant 0 : index
    %12 = vector.load %arg8[%c0_2, %c0_3] : memref<128x128xf32, #tpu.memory_space<vmem>>, vector<128x128xf32>
    %c0_4 = arith.constant 0 : index
    %c0_5 = arith.constant 0 : index
    %13 = vector.load %arg3[%c0_4, %c0_5] : memref<256x128xf32, #tpu.memory_space<vmem>>, vector<256x128xf32>
    %cst = arith.constant dense<0.000000e+00> : vector<128x128xf32>
    %14 = tpu.matmul %11, %13, %cst {dimension_numbers = #tpu.dot_dimension_numbers<[1], [0], [0], [1], [0, 0, 1, 1], [], []>} : vector<128x256xf32>, vector<256x128xf32>, vector<128x128xf32> -> vector<128x128xf32>
    %15 = arith.addf %12, %14 : vector<128x128xf32>
    %c0_6 = arith.constant 0 : index
    %c0_7 = arith.constant 0 : index
    %16 = vector.load %arg8[%c0_6, %c0_7] : memref<128x128xf32, #tpu.memory_space<vmem>>, vector<128x128xf32>
    tpu.vector_store %arg8[%c0_6, %c0_7], %15 {strides = array<i32>} : memref<128x128xf32, #tpu.memory_space<vmem>>, vector<128x128xf32>,
    %c1_i32 = arith.constant 1 : i32
    %17 = arith.cmpi eq, %arg1, %c1_i32 : i32
    %18 = arith.extui %17 : i1 to i32
    %c0_i32_8 = arith.constant 0 : i32
    %19 = arith.cmpi ne, %18, %c0_i32_8 : i32
    scf.if %19 {
      %c0_9 = arith.constant 0 : index
      %c0_10 = arith.constant 0 : index
      %20 = vector.load %arg8[%c0_9, %c0_10] : memref<128x128xf32, #tpu.memory_space<vmem>>, vector<128x128xf32>
      %cst_11 = arith.constant dense<0.000000e+00> : vector<128xf32>
      %21 = vector.multi_reduction <add>, %20, %cst_11 [1] : vector<128x128xf32> to vector<128xf32>
      %22 = vector.shape_cast %21 : vector<128xf32> to vector<128x1xf32>
      %cst_12 = arith.constant 1.280000e+02 : f32
      %23 = vector.broadcast %cst_12 : f32 to vector<128x1xf32>
      %24 = arith.divf %22, %23 : vector<128x1xf32>
      %25 = vector.broadcast %24 : vector<128x1xf32> to vector<128x128xf32>
      %26 = arith.subf %20, %25 : vector<128x128xf32>
      %27 = arith.mulf %26, %26 : vector<128x128xf32>
      %cst_13 = arith.constant dense<0.000000e+00> : vector<128xf32>
      %28 = vector.multi_reduction <add>, %27, %cst_13 [1] : vector<128x128xf32> to vector<128xf32>
      %29 = vector.shape_cast %28 : vector<128xf32> to vector<128x1xf32>
      %cst_14 = arith.constant 1.280000e+02 : f32
      %30 = vector.broadcast %cst_14 : f32 to vector<128x1xf32>
      %31 = arith.divf %29, %30 : vector<128x1xf32>
      %32 = vector.broadcast %24 : vector<128x1xf32> to vector<128x128xf32>
      %33 = arith.subf %20, %32 : vector<128x128xf32>
      %cst_15 = arith.constant 9.99999996E-13 : f32
      %34 = vector.broadcast %cst_15 : f32 to vector<128x1xf32>
      %35 = arith.addf %31, %34 : vector<128x1xf32>
      %36 = math.rsqrt %35 : vector<128x1xf32>
      %37 = vector.broadcast %36 : vector<128x1xf32> to vector<128x128xf32>
      %38 = arith.mulf %33, %37 : vector<128x128xf32>
      %c0_16 = arith.constant 0 : index
      %c0_17 = arith.constant 0 : index
      %39 = vector.load %arg5[%c0_16, %c0_17] : memref<1x128xf32, #tpu.memory_space<vmem>>, vector<1x128xf32>
      %40 = vector.broadcast %39 : vector<1x128xf32> to vector<128x128xf32>
      %41 = arith.mulf %38, %40 : vector<128x128xf32>
      %c0_18 = arith.constant 0 : index
      %c0_19 = arith.constant 0 : index
      %42 = vector.load %arg6[%c0_18, %c0_19] : memref<1x128xf32, #tpu.memory_space<vmem>>, vector<1x128xf32>
      %43 = vector.broadcast %42 : vector<1x128xf32> to vector<128x128xf32>
      %44 = arith.addf %41, %43 : vector<128x128xf32>
      %c0_20 = arith.constant 0 : index
      %c0_21 = arith.constant 0 : index
      %45 = vector.load %arg7[%c0_20, %c0_21] : memref<128x128xf32, #tpu.memory_space<vmem>>, vector<128x128xf32>
      tpu.vector_store %arg7[%c0_20, %c0_21], %44 {strides = array<i32>} : memref<128x128xf32, #tpu.memory_space<vmem>>, vector<128x128xf32>,
    } else {
    }
    return
  }
  func.func @transform_0(%arg0: i32, %arg1: i32) -> (i32, i32) {
    %c0_i32 = arith.constant 0 : i32
    %c0_i32_0 = arith.constant 0 : i32
    return %arg0, %c0_i32 : i32, i32
  }
  func.func @transform_1(%arg0: i32, %arg1: i32) -> (i32, i32) {
    %c0_i32 = arith.constant 0 : i32
    %c0_i32_0 = arith.constant 0 : i32
    return %arg1, %c0_i32 : i32, i32
  }
  func.func @transform_2(%arg0: i32, %arg1: i32) -> (i32, i32) {
    %c0_i32 = arith.constant 0 : i32
    %c0_i32_0 = arith.constant 0 : i32
    return %arg0, %c0_i32 : i32, i32
  }
  func.func @transform_3(%arg0: i32, %arg1: i32) -> (i32, i32) {
    %c0_i32 = arith.constant 0 : i32
    %c0_i32_0 = arith.constant 0 : i32
    %c0_i32_1 = arith.constant 0 : i32
    return %c0_i32, %c0_i32_0 : i32, i32
  }
  func.func @transform_4(%arg0: i32, %arg1: i32) -> (i32, i32) {
    %c0_i32 = arith.constant 0 : i32
    %c0_i32_0 = arith.constant 0 : i32
    %c0_i32_1 = arith.constant 0 : i32
    return %c0_i32, %c0_i32_0 : i32, i32
  }
  func.func @transform_5(%arg0: i32, %arg1: i32) -> (i32, i32) {
    %c0_i32 = arith.constant 0 : i32
    %c0_i32_0 = arith.constant 0 : i32
    return %arg0, %c0_i32 : i32, i32
  }
}

</mosaic_0001>

<bundles_post_ra>
// kernel: tpu_custom_call.1
= control target key start
LH: loop header
LB: loop body
LE: loop exit
PB: predicated region body
PF: predicated region fallthrough
CT: control target
= control target key end

     0   :  { %10 = vsyncpa [#allocation4], 0  ;;  %s2370_s0 = inlined_call_operand.vmem [shape: s32[256,1], index: 0, kind: input, shape index: {}]   ;;  %s2371_s1 = inlined_call_operand.hbm [shape: f32[512,128], index: 1, kind: input, shape index: {}]   ;;  %s2372_s2 = inlined_call_operand.vmem [shape: f32[256,128], index: 2, kind: input, shape index: {}]   ;;  %s2373_s3 = inlined_call_operand.vmem [shape: f32[1,128], index: 3, kind: input, shape index: {}]   ;;  %s2374_s4 = inlined_call_operand.vmem [shape: f32[1,128], index: 4, kind: input, shape index: {}]   ;;  %s2375_s5 = inlined_call_operand.hbm [shape: f32[256,128], index: 5, kind: output, shape index: {}]  }
   0x1   :  { %12 = vsyncpa [#allocation4 + $0x1], 0 }
   0x2   :  { %13 = vsyncpa [#allocation5], 0 }
   0x3   :  { %15 = vsyncpa [#allocation5 + $0x1], 0  ;;  %s1702_s18 = smov 0   ;;  %s1704_s19 = smov 0  }
   0x4   :  { %s1706_s20 = smov 0   ;;  %s1708_s21 = smov 0  }
   0x5   :  { %s1710_s22 = smov 0   ;;  %s1712_s23 = smov 0  }
   0x6   :  { %s1714_s24 = smov 0   ;;  %s1716_s25 = smov 0  }
   0x7   :  { %s1718_s26 = smov 0   ;;  %s1720_s27 = smov 0  }
   0x8   :  { %s1722_s28 = smov 0  }
   0x9 LB: > { %2381 = sst [smem:[#allocation9_spill]] %s1643_s23  ;;  %s1243_s29 = sadd.s32 4294967295, %s1663_s28   ;;  %s1663_s28 = sphi %s1722_s28, %s21_s28   ;;  %s1659_s27 = sphi %s1720_s27, %s2396_s27   ;;  %s1655_s26 = sphi %s1718_s26, %s2395_s26   ;;  %s1651_s25 = sphi %s1716_s25, %s2394_s25   ;;  %s1647_s24 = sphi %s1714_s24, %s2393_s24   ;;  %s1643_s23 = sphi %s1712_s23, %s2392_s23   ;;  %s1639_s22 = sphi %s1710_s22, %s2401_s22   ;;  %s1635_s21 = sphi %s1708_s21, %s2400_s21   ;;  %s1631_s20 = sphi %s1706_s20, %s2399_s20   ;;  %s1627_s19 = sphi %s1704_s19, %s2398_s19   ;;  %s1623_s18 = sphi %s1702_s18, %s2397_s18  }
   0xa   : > { %2382 = sst [smem:[#allocation10_spill]] %s1655_s26  ;;  %s1244_s30 = sadd.s32 4294967294, %s1663_s28  }
   0xb   : > { %2383 = sst [smem:[#allocation11_spill]] %s1659_s27  ;;  %s30_s6 = sadd.s32 1, %s1655_s26 }
   0xc   : > { %s33_s7 = sadd.s32 1, %s1659_s27  ;;  %p31_p0 = scmp.ge.s32.totalorder %s30_s6, 2 }
   0xd   : > { %s66_s8 = sadd.s32 1, %s1643_s23  ;;  %p73_p1 = scmp.ne.s32.totalorder %s1643_s23, %s1639_s22 }
   0xe   : > { %p74_p2 = scmp.eq.s32.totalorder %s1663_s28, 0  ;;  %s2403_s6 = smov (%p31_p0, %s30_s6), 0 }
   0xf   : > { %2384 = sst [smem:[#allocation12_spill]] %s2403_s6  ;;  %s2405_s7 = smov (!%p31_p0, %s33_s7), %s1659_s27 }
  0x10   : > { %s63_s9 = ssub.s32 %s1655_s26, %s2403_s6  ;;  %p1768_p3 = por %p74_p2, %p73_p1 }
  0x11   : > { %p35_p4 = scmp.ge.s32.totalorder %s2405_s7, 2  ;;  %p64_p5 = scmp.eq.s32.totalorder %s63_s9, 0 }
  0x12   : > { %p79_p6 = scmp.ne.s32.totalorder %s1639_s22, %s1635_s21  ;;  %p80_p7 = scmp.eq.s32.totalorder %s1243_s29, 0 }
  0x13   : > { %s2407_s7 = smov (%p35_p4, %s2405_s7), 0  ;;  %s160_s14 = sadd.s32 1, %s1631_s20 }
  0x14   : > { %2386 = sst [smem:[#allocation13_spill]] %s2407_s7  ;;  %p1778_p8 = por %p80_p7, %p79_p6 }
  0x15   : > { %s1776_s11 = scalar_select %p64_p5, %s1643_s23, %s66_s8  }
  0x16   : > { %s157_s13 = ssub.s32 %s1659_s27, %s2407_s7  ;;  %p170_p10 = scmp.ne.s32.totalorder %s1631_s20, %s1627_s19 }
  0x17   : > { %2387 = sst [smem:[#allocation14_spill]] %s1776_s11  ;;  %p158_p9 = scmp.eq.s32.totalorder %s157_s13, 0 }
  0x18   : > { %p171_p11 = scmp.eq.s32.totalorder %s1243_s29, 3  ;;  %p176_p13 = scmp.ne.s32.totalorder %s1627_s19, %s1623_s18 }
  0x19   : > { %s1788_s15 = scalar_select %p158_p9, %s1631_s20, %s160_s14  }
  0x1a   : > { %p1790_p12 = por %p171_p11, %p170_p10  ;;  %p177_p0 = scmp.eq.s32.totalorder %s1244_s30, 3 }
  0x1b   : > { %p1375_p1 = scmp.lt.s32.totalorder %s1663_s28, 4  ;;  %s212_s17 = sand.u32 1, %s1643_s23  }
  0x1c   : > { %p1798_p2 = por %p177_p0, %p176_p13  ;;  %s1247_s8 = sshll.u32 %s212_s17, 8 }
  0x1d   : > { %s1329_s9 = sshll.u32 %s1655_s26, 8  ;;  %s216_s6 = scalar_lea.vmem [#allocation3], %s1247_s8 }
  0x1e   : > { %s221_s14 = scalar_lea.hbm %s2371_s1, %s1329_s9  ;;  %s224_s27 = sshll.u32 %s216_s6, 4  ;;  %s225_s27 = int_to_ptr.vmem [resolvable:$true] %s224_s27 }
  0x1f   : > { %s222_s7 = sshll.u32 %s221_s14, 4  ;;  %p1368_p4 = pnand %p1375_p1, %p1768_p3  ;;  %s223_s7 = int_to_ptr.hbm [resolvable:$true] %s222_s7 }
  0x20   : > { %p1250_p5 = scmp.ge.s32.totalorder %s1663_s28, 1  ;;  %p241_p6 = scmp.lt.s32.totalorder %s1663_s28, 5 }
  0x21   : > { %s213_s30 = scalar_lea.sflag [#allocation4], %s212_s17  ;;  %s1665_s11 = smov 128  }
  0x22   : > { %s1666_s23 = smov 8   ;;  %p242_p7 = pnand %p1250_p5, %p241_p6 }
  0x23   : > { %1370 = dma.hbm_to_vmem [thread:$0]  (!%p1368_p4), %s223_s7, 4096, %s225_s27, %s213_s30, %s1665_s11, %s1665_s11, %s1666_s23  }
  0x24   : > { %245 = sbr.rel (%p242_p7) target bundleno = 715 (0x2cb), region = 40  ;;  %s247_s26 = sand.u32 (!%p242_p7), 1, %s1639_s22  }
  0x25   : > { %s1251_s29 = sshll.u32 (!%p242_p7), %s247_s26, 8  ;;  %s248_s9 = scalar_lea.sflag (!%p242_p7), [#allocation4], %s247_s26 }
  0x26   : > { %s1811_s13 = scalar_lea.vmem (!%p242_p7), [#allocation3], %s1251_s29 }
  0x29   : > { %1614 = dma.done.wait (%p1778_p8), %s248_s9, 4096  }
  0x2a   : > { %1616 = vsyncadd (%p1778_p8), %s248_s9, 4294963200  ;;  %s286_s6 = sand.u32 1, %s1627_s19   ;;  %s1253_s10 = sshll.u32 %s1651_s25, 4 }
  0x2b   : > { %s1252_s23 = sshll.u32 %s286_s6, 7  ;;  %p290_p3 = scmp.lt.s32.totalorder %s1253_s10, 31 }
  0x2c   : > { %s1831_s14 = scalar_lea.vmem [#allocation6], %s1252_s23  ;;  %p1257_p8 = scmp.ne.s32.totalorder %s1647_s24, 0 }
  0x2d   : > { %s2409_s10 = smov (!%p290_p3, %s1253_s10), 31 }
  0x2e   : > { %s1254_s27 = sshll.u32 %s2409_s10, 3  ;;  %306 = sbr.rel (%p1257_p8) target bundleno = 68 (0x44), region = 48 }
  0x2f   : > { %s1824_s26 = scalar_lea.vmem %s2370_s0, %s1254_s27  ;;  %s1829_s12 = scalar_lea.vmem %s2372_s2, %s1254_s27 }
  0x33   : > { %v307_v0 = vld [vmem:[%s1829_s12] sm:$0xff]  ;;  %v308_v1 = vld [vmem:[%s1829_s12 + $0x8] sm:$0xff]  ;;  %v309_v2 = vld [vmem:[%s1829_s12 + $0x10] sm:$0xff] }
  0x34   : > { %323 = vst [vmem:[#allocation2 + $0x30] sm:$0xff] %v307_v0  ;;  %v310_v3 = vld [vmem:[%s1829_s12 + $0x18] sm:$0xff]  ;;  %v311_v4 = vld [vmem:[%s1829_s12 + $0x20] sm:$0xff]  ;;  %v312_v5 = vld [vmem:[%s1829_s12 + $0x28] sm:$0xff] }
  0x35   : > { %324 = vst [vmem:[#allocation2] sm:$0xff] %v308_v1  ;;  %v313_v6 = vld [vmem:[%s1829_s12 + $0x30] sm:$0xff]  ;;  %v314_v7 = vld [vmem:[%s1829_s12 + $0x38] sm:$0xff]  ;;  %v315_v8 = vld [vmem:[%s1829_s12 + $0x40] sm:$0xff] }
  0x36   : > { %325 = vst [vmem:[#allocation2 + $0x58] sm:$0xff] %v309_v2  ;;  %v316_v9 = vld [vmem:[%s1829_s12 + $0x48] sm:$0xff]  ;;  %v317_v10 = vld [vmem:[%s1829_s12 + $0x50] sm:$0xff]  ;;  %v318_v11 = vld [vmem:[%s1829_s12 + $0x58] sm:$0xff] }
  0x37   : > { %326 = vst [vmem:[#allocation2 + $0x18] sm:$0xff] %v310_v3  ;;  %v319_v12 = vld [vmem:[%s1829_s12 + $0x60] sm:$0xff]  ;;  %v320_v13 = vld [vmem:[%s1829_s12 + $0x68] sm:$0xff]  ;;  %v321_v14 = vld [vmem:[%s1829_s12 + $0x70] sm:$0xff] }
  0x38   : > { %327 = vst [vmem:[#allocation2 + $0x50] sm:$0xff] %v311_v4  ;;  %v322_v15 = vld [vmem:[%s1829_s12 + $0x78] sm:$0xff] }
  0x39   : > { %328 = vst [vmem:[#allocation2 + $0x68] sm:$0xff] %v312_v5 }
  0x3a   : > { %329 = vst [vmem:[#allocation2 + $0x8] sm:$0xff] %v313_v6 }
  0x3b   : > { %330 = vst [vmem:[#allocation2 + $0x48] sm:$0xff] %v314_v7 }
  0x3c   : > { %331 = vst [vmem:[#allocation2 + $0x40] sm:$0xff] %v315_v8 }
  0x3d   : > { %332 = vst [vmem:[#allocation2 + $0x20] sm:$0xff] %v316_v9 }
  0x3e   : > { %333 = vst [vmem:[#allocation2 + $0x10] sm:$0xff] %v317_v10 }
  0x3f   : > { %334 = vst [vmem:[#allocation2 + $0x38] sm:$0xff] %v318_v11 }
  0x40   : > { %335 = vst [vmem:[#allocation2 + $0x60] sm:$0xff] %v319_v12 }
  0x41   : > { %336 = vst [vmem:[#allocation2 + $0x70] sm:$0xff] %v320_v13 }
  0x42   : > { %337 = vst [vmem:[#allocation2 + $0x78] sm:$0xff] %v321_v14 }
  0x43   : > { %338 = vst [vmem:[#allocation2 + $0x28] sm:$0xff] %v322_v15 }
  0x44 PF: > { %v348_v16 = vld [vmem:[%s1824_s26 + $0x48] sm:$0xff]  ;;  %v347_v17 = vld [vmem:[%s1824_s26 + $0x40] sm:$0xff]  ;;  %v1667_v18 = vmov 0   ;;  %v349_v19 = vld [vmem:[%s1824_s26 + $0x50] sm:$0xff]  ;;  %v355_v1 = vlaneseq  ;;  %s1258_s30 = sshll.u32 %s1647_s24, 8  ;;  %v1668_v8 = vmov 1.0  }
  0x45   : > { %1473 = vset.pattern.permute.xlu1 %v1667_v18  ;;  %1472 = vset.pattern.permute.xlu0 %v1667_v18  ;;  %v340_v20 = vld [vmem:[%s1824_s26 + $0x8] sm:$0xff]  ;;  %v339_v21 = vld [vmem:[%s1824_s26] sm:$0xff]  ;;  %v341_v22 = vld [vmem:[%s1824_s26 + $0x10] sm:$0xff]  ;;  %v359_v4 = vstv %s1258_s30  ;;  %p1323_p9 = scmp.ne.s32.totalorder %s1647_s24, 1 }
  0x46   : > { %390 = vperm.xlu1 %1473, %v348_v16   ;;  %387 = vperm.xlu0 %1472, %v347_v17   ;;  %v537_v23 = vld [vmem:[%s1811_s13 + $0x78] sm:$0xff]  ;;  %v536_v25 = vld [vmem:[%s1811_s13 + $0x70] sm:$0xff]  ;;  %v535_v27 = vld [vmem:[%s1811_s13 + $0x68] sm:$0xff]  ;;  %v356_v2 = vand.u32 127, %v355_v1 }
  0x47   : > { %1474 = vset.pattern.permute.xlu2 %v1667_v18  ;;  %v553_v24 = vld [vmem:[%s1811_s13 + $0xf8] sm:$0xff]  ;;  %1331 = vmatpush.msra.mxu2 %v537_v23  ;;  %v552_v26 = vld [vmem:[%s1811_s13 + $0xf0] sm:$0xff]  ;;  %v551_v28 = vld [vmem:[%s1811_s13 + $0xe8] sm:$0xff] }
  0x48   : > { %393 = vperm.xlu2 %1474, %v349_v19   ;;  %1347 = vmatpush.msra.mxu3 %v553_v24  ;;  %v534_v29 = vld [vmem:[%s1811_s13 + $0x60] sm:$0xff]  ;;  %v342_v31 = vld [vmem:[%s1824_s26 + $0x18] sm:$0xff]  ;;  %v532_v36 = vld [vmem:[%s1811_s13 + $0x50] sm:$0xff]  ;;  %v357_v3 = vadd.s32 128, %v356_v2  ;;  %v1899_v5 = vadd.s32 %v359_v4, %v356_v2 }
  0x49   : > { %554 = vmatpush.msra.mxu0 %v537_v23  ;;  %1332 = vmatpush.msra.mxu2 %v536_v25  ;;  %v550_v30 = vld [vmem:[%s1811_s13 + $0xe0] sm:$0xff]  ;;  %v350_v32 = vld [vmem:[%s1824_s26 + $0x58] sm:$0xff]  ;;  %v548_v37 = vld [vmem:[%s1811_s13 + $0xd0] sm:$0xff] }
  0x4a   : > { %1348 = vmatpush.msra.mxu3 %v552_v26  ;;  %619 = vmatpush.msra.mxu1 %v553_v24  ;;  %v533_v33 = vld [vmem:[%s1811_s13 + $0x58] sm:$0xff]  ;;  %v351_v35 = vld [vmem:[%s1824_s26 + $0x60] sm:$0xff]  ;;  %v531_v38 = vld [vmem:[%s1811_s13 + $0x48] sm:$0xff]  ;;  %v1901_v6 = vadd.s32 %v359_v4, %v357_v3 }
  0x4b   : > { %555 = vmatpush.msra.mxu0 %v536_v25  ;;  %1333 = vmatpush.msra.mxu2 %v535_v27  ;;  %v549_v34 = vld [vmem:[%s1811_s13 + $0xd8] sm:$0xff]  ;;  %v547_v39 = vld [vmem:[%s1811_s13 + $0xc8] sm:$0xff]  ;;  %v343_v41 = vld [vmem:[%s1824_s26 + $0x20] sm:$0xff] }
  0x4c   : > { %1349 = vmatpush.msra.mxu3 %v551_v28  ;;  %620 = vmatpush.msra.mxu1 %v552_v26  ;;  %v352_v40 = vld [vmem:[%s1824_s26 + $0x68] sm:$0xff]  ;;  %v345_v43 = vld [vmem:[%s1824_s26 + $0x30] sm:$0xff]  ;;  %v354_v45 = vld [vmem:[%s1824_s26 + $0x78] sm:$0xff] }
  0x4d   : > { %556 = vmatpush.msra.mxu0 %v535_v27  ;;  %1334 = vmatpush.msra.mxu2 %v534_v29  ;;  %v344_v42 = vld [vmem:[%s1824_s26 + $0x28] sm:$0xff]  ;;  %v353_v44 = vld [vmem:[%s1824_s26 + $0x70] sm:$0xff]  ;;  %v346_v46 = vld [vmem:[%s1824_s26 + $0x38] sm:$0xff] }
  0x4e   : > { %366 = vperm.xlu1 %1473, %v340_v20   ;;  %363 = vperm.xlu0 %1472, %v339_v21   ;;  %v530_v47 = vld [vmem:[%s1811_s13 + $0x40] sm:$0xff]  ;;  %v529_v49 = vld [vmem:[%s1811_s13 + $0x38] sm:$0xff]  ;;  %v528_v51 = vld [vmem:[%s1811_s13 + $0x30] sm:$0xff] }
  0x4f   : > { %1350 = vmatpush.msra.mxu3 %v550_v30  ;;  %1335 = vmatpush.msra.mxu2 %v533_v33  ;;  %v546_v48 = vld [vmem:[%s1811_s13 + $0xc0] sm:$0xff]  ;;  %v545_v50 = vld [vmem:[%s1811_s13 + $0xb8] sm:$0xff]  ;;  %v544_v52 = vld [vmem:[%s1811_s13 + $0xb0] sm:$0xff] }
  0x50   : > { %369 = vperm.xlu2 %1474, %v341_v22   ;;  %621 = vmatpush.msra.mxu1 %v551_v28  ;;  %v527_v53 = vld [vmem:[%s1811_s13 + $0x28] sm:$0xff]  ;;  %v526_v55 = vld [vmem:[%s1811_s13 + $0x20] sm:$0xff]  ;;  %v525_v57 = vld [vmem:[%s1811_s13 + $0x18] sm:$0xff] }
  0x51   : > { %1351 = vmatpush.msra.mxu3 %v549_v34  ;;  %1336 = vmatpush.msra.mxu2 %v532_v36  ;;  %v543_v54 = vld [vmem:[%s1811_s13 + $0xa8] sm:$0xff]  ;;  %v542_v56 = vld [vmem:[%s1811_s13 + $0xa0] sm:$0xff]  ;;  %v541_v58 = vld [vmem:[%s1811_s13 + $0x98] sm:$0xff] }
  0x52   : > { %557 = vmatpush.msra.mxu0 %v534_v29  ;;  %622 = vmatpush.msra.mxu1 %v550_v30  ;;  %v524_v59 = vld [vmem:[%s1811_s13 + $0x10] sm:$0xff]  ;;  %v523_v61 = vld [vmem:[%s1811_s13 + $0x8] sm:$0xff]  ;;  %v522_v63 = vld [vmem:[%s1811_s13] sm:$0xff] }
  0x53   : > { %1352 = vmatpush.msra.mxu3 %v548_v37  ;;  %1337 = vmatpush.msra.mxu2 %v531_v38  ;;  %v540_v60 = vld [vmem:[%s1811_s13 + $0x90] sm:$0xff]  ;;  %v539_v62 = vld [vmem:[%s1811_s13 + $0x88] sm:$0xff]  ;;  %v538_v0 = vld [vmem:[%s1811_s13 + $0x80] sm:$0xff] }
  0x54   : > { %558 = vmatpush.msra.mxu0 %v533_v33  ;;  %623 = vmatpush.msra.mxu1 %v549_v34  ;;  %v514_v25 = vld [vmem:[#allocation2 + $0x40] sm:$0xff]  ;;  %v506_v30 = vld [vmem:[#allocation2 + $0x30] sm:$0xff] }
  0x55   : > { %1353 = vmatpush.msra.mxu3 %v547_v39  ;;  %1338 = vmatpush.msra.mxu2 %v530_v47  ;;  %v518_v1 = vld [vmem:[#allocation2 + $0x60] sm:$0xff] }
  0x56   : > { %372 = vperm.xlu1 %1473, %v342_v31   ;;  %396 = vperm.xlu0 %1472, %v350_v32  }
  0x57   : > { %559 = vmatpush.msra.mxu0 %v532_v36  ;;  %624 = vmatpush.msra.mxu1 %v548_v37 }
  0x58   : > { %399 = vperm.xlu2 %1474, %v351_v35   ;;  %1354 = vmatpush.msra.mxu3 %v546_v48  ;;  %v515_v35 = vld [vmem:[#allocation2 + $0x20] sm:$0xff] }
  0x59   : > { %560 = vmatpush.msra.mxu0 %v531_v38  ;;  %625 = vmatpush.msra.mxu1 %v547_v39  ;;  %v507_v39 = vld [vmem:[#allocation2] sm:$0xff] }
  0x5a   : > { %1339 = vmatpush.msra.mxu2 %v529_v49  ;;  %1355 = vmatpush.msra.mxu3 %v545_v50 }
  0x5b   : > { %561 = vmatpush.msra.mxu0 %v530_v47  ;;  %626 = vmatpush.msra.mxu1 %v546_v48 }
  0x5c   : > { %1340 = vmatpush.msra.mxu2 %v528_v51  ;;  %1356 = vmatpush.msra.mxu3 %v544_v52 }
  0x5d   : > { %562 = vmatpush.msra.mxu0 %v529_v49  ;;  %627 = vmatpush.msra.mxu1 %v545_v50  ;;  %v508_v49 = vld [vmem:[#allocation2 + $0x58] sm:$0xff] }
  0x5e   : > { %402 = vperm.xlu1 %1473, %v352_v40   ;;  %375 = vperm.xlu0 %1472, %v343_v41  }
  0x5f   : > { %563 = vmatpush.msra.mxu0 %v528_v51  ;;  %628 = vmatpush.msra.mxu1 %v544_v52 }
  0x60   : > { %378 = vperm.xlu2 %1474, %v344_v42   ;;  %1341 = vmatpush.msra.mxu2 %v527_v53 }
  0x61   : > { %1357 = vmatpush.msra.mxu3 %v543_v54  ;;  %564 = vmatpush.msra.mxu0 %v527_v53 }
  0x62   : > { %629 = vmatpush.msra.mxu1 %v543_v54  ;;  %1342 = vmatpush.msra.mxu2 %v526_v55 }
  0x63   : > { %1358 = vmatpush.msra.mxu3 %v542_v56  ;;  %565 = vmatpush.msra.mxu0 %v526_v55  ;;  %v517_v55 = vld [vmem:[#allocation2 + $0x38] sm:$0xff] }
  0x64   : > { %630 = vmatpush.msra.mxu1 %v542_v56  ;;  %1343 = vmatpush.msra.mxu2 %v525_v57 }
  0x65   : > { %1359 = vmatpush.msra.mxu3 %v541_v58  ;;  %566 = vmatpush.msra.mxu0 %v525_v57 }
  0x66   : > { %381 = vperm.xlu1 %1473, %v345_v43   ;;  %405 = vperm.xlu0 %1472, %v353_v44  }
  0x67   : > { %631 = vmatpush.msra.mxu1 %v541_v58  ;;  %1344 = vmatpush.msra.mxu2 %v524_v59 }
  0x68   : > { %408 = vperm.xlu2 %1474, %v354_v45   ;;  %1360 = vmatpush.msra.mxu3 %v540_v60  ;;  %v516_v45 = vld [vmem:[#allocation2 + $0x10] sm:$0xff] }
  0x69   : > { %567 = vmatpush.msra.mxu0 %v524_v59  ;;  %632 = vmatpush.msra.mxu1 %v540_v60  ;;  %v509_v59 = vld [vmem:[#allocation2 + $0x18] sm:$0xff] }
  0x6a   : > { %1345 = vmatpush.msra.mxu2 %v523_v61  ;;  %1361 = vmatpush.msra.mxu3 %v539_v62 }
  0x6b   : > { %568 = vmatpush.msra.mxu0 %v523_v61  ;;  %633 = vmatpush.msra.mxu1 %v539_v62 }
  0x6c   : > { %1346 = vmatpush.msra.mxu2 %v522_v63  ;;  %1362 = vmatpush.msra.mxu3 %v538_v0 }
  0x6d   : > { %569 = vmatpush.msra.mxu0 %v522_v63  ;;  %634 = vmatpush.msra.mxu1 %v538_v0 }
  0x6e   : > { %384 = vperm.xlu0 %1472, %v346_v46  }
  0xa2   : > { %v394_v11 = vpop.permute.xlu2 %393 }
  0xa3   : > { %vm430_vm6 = vcmp.eq.s32.totalorder %v1899_v5, %v394_v11  ;;  %vm431_vm7 = vcmp.eq.s32.totalorder %v1901_v6, %v394_v11  ;;  %v519_v11 = vld [vmem:[#allocation2 + $0x70] sm:$0xff] }
  0xaa   : > { %v370_v13 = vpop.permute.xlu2 %369 }
  0xab   : > { %vm414_vm10 = vcmp.eq.s32.totalorder %v1899_v5, %v370_v13  ;;  %vm415_vm12 = vcmp.eq.s32.totalorder %v1901_v6, %v370_v13 }
  0xb2   : > { %v400_v16 = vpop.permute.xlu2 %399 }
  0xb3   : > { %vm434_vm15 = vcmp.eq.s32.totalorder %v1899_v5, %v400_v16 }
  0xb8   : > { %v388_v7 = vpop.permute.xlu0 %387  ;;  %v391_v9 = vpop.permute.xlu1 %390 }
  0xb9   : > { %vm426_vm0 = vcmp.eq.s32.totalorder %v1899_v5, %v388_v7  ;;  %vm427_vm1 = vcmp.eq.s32.totalorder %v1901_v6, %v388_v7  ;;  %vm428_vm2 = vcmp.eq.s32.totalorder %v1899_v5, %v391_v9  ;;  %vm429_vm3 = vcmp.eq.s32.totalorder %v1901_v6, %v391_v9 }
  0xba   : > { %1299 = vmatmul.msk.f32.vlgmr.msra.gmra.mxu2 %vm426_vm0, %v1668_v8  ;;  %1315 = vmatmul.msk.f32.vlgmr.msra.gmra.mxu3 %vm427_vm1, %v1668_v8  ;;  %vm435_vm1 = vcmp.eq.s32.totalorder %v1901_v6, %v400_v16  ;;  %v379_v19 = vpop.permute.xlu2 %378 }
  0xc0   : > { %v364_v10 = vpop.permute.xlu0 %363  ;;  %v367_v12 = vpop.permute.xlu1 %366 }
  0xc1   : > { %vm410_vm4 = vcmp.eq.s32.totalorder %v1899_v5, %v364_v10  ;;  %vm411_vm5 = vcmp.eq.s32.totalorder %v1901_v6, %v364_v10  ;;  %vm412_vm8 = vcmp.eq.s32.totalorder %v1899_v5, %v367_v12  ;;  %vm413_vm9 = vcmp.eq.s32.totalorder %v1901_v6, %v367_v12 }
  0xc2   : > { %1291 = vmatmul.msk.f32.vlgmr.msra.gmra.mxu0 %vm410_vm4, %v1668_v8  ;;  %1300 = vmatmul.msk.f32.gmra.mxu2 %vm428_vm2, %v1668_v8  ;;  %v409_v21 = vpop.permute.xlu2 %408 }
  0xc3   : > { %1307 = vmatmul.msk.f32.vlgmr.msra.gmra.mxu1 %vm411_vm5, %v1668_v8  ;;  %1316 = vmatmul.msk.f32.gmra.mxu3 %vm429_vm3, %v1668_v8 }
  0xc8   : > { %v397_v14 = vpop.permute.xlu0 %396  ;;  %v373_v15 = vpop.permute.xlu1 %372 }
  0xc9   : > { %vm432_vm11 = vcmp.eq.s32.totalorder %v1899_v5, %v397_v14  ;;  %vm433_vm13 = vcmp.eq.s32.totalorder %v1901_v6, %v397_v14  ;;  %vm416_vm14 = vcmp.eq.s32.totalorder %v1899_v5, %v373_v15  ;;  %vm417_vm0 = vcmp.eq.s32.totalorder %v1901_v6, %v373_v15  ;;  %v511_v15 = vld [vmem:[#allocation2 + $0x68] sm:$0xff] }
  0xca   : > { %1292 = vmatmul.msk.f32.gmra.mxu0 %vm412_vm8, %v1668_v8  ;;  %1301 = vmatmul.msk.f32.gmra.mxu2 %vm430_vm6, %v1668_v8  ;;  %vm420_vm6 = vcmp.eq.s32.totalorder %v1899_v5, %v379_v19  ;;  %vm421_vm8 = vcmp.eq.s32.totalorder %v1901_v6, %v379_v19 }
  0xcb   : > { %1308 = vmatmul.msk.f32.gmra.mxu1 %vm413_vm9, %v1668_v8  ;;  %1317 = vmatmul.msk.f32.gmra.mxu3 %vm431_vm7, %v1668_v8 }
  0xd0   : > { %v376_v17 = vpop.permute.xlu0 %375  ;;  %v403_v18 = vpop.permute.xlu1 %402 }
  0xd1   : > { %vm418_vm2 = vcmp.eq.s32.totalorder %v1899_v5, %v376_v17  ;;  %vm436_vm3 = vcmp.eq.s32.totalorder %v1899_v5, %v403_v18  ;;  %vm419_vm4 = vcmp.eq.s32.totalorder %v1901_v6, %v376_v17  ;;  %vm437_vm5 = vcmp.eq.s32.totalorder %v1901_v6, %v403_v18 }
  0xd2   : > { %1293 = vmatmul.msk.f32.gmra.mxu0 %vm414_vm10, %v1668_v8  ;;  %1302 = vmatmul.msk.f32.gmra.mxu2 %vm432_vm11, %v1668_v8  ;;  %vm440_vm10 = vcmp.eq.s32.totalorder %v1899_v5, %v409_v21 }
  0xd3   : > { %1309 = vmatmul.msk.f32.gmra.mxu1 %vm415_vm12, %v1668_v8  ;;  %1318 = vmatmul.msk.f32.gmra.mxu3 %vm433_vm13, %v1668_v8  ;;  %vm441_vm12 = vcmp.eq.s32.totalorder %v1901_v6, %v409_v21  ;;  %v520_v21 = vld [vmem:[#allocation2 + $0x78] sm:$0xff] }
  0xd8   : > { %v406_v20 = vpop.permute.xlu0 %405  ;;  %v382_v22 = vpop.permute.xlu1 %381 }
  0xd9   : > { %vm438_vm7 = vcmp.eq.s32.totalorder %v1899_v5, %v406_v20  ;;  %vm439_vm9 = vcmp.eq.s32.totalorder %v1901_v6, %v406_v20  ;;  %vm422_vm11 = vcmp.eq.s32.totalorder %v1899_v5, %v382_v22  ;;  %vm423_vm13 = vcmp.eq.s32.totalorder %v1901_v6, %v382_v22 }
  0xda   : > { %1294 = vmatmul.msk.f32.gmra.mxu0 %vm416_vm14, %v1668_v8  ;;  %1303 = vmatmul.msk.f32.gmra.mxu2 %vm434_vm15, %v1668_v8 }
  0xdb   : > { %1310 = vmatmul.msk.f32.gmra.mxu1 %vm417_vm0, %v1668_v8  ;;  %1319 = vmatmul.msk.f32.gmra.mxu3 %vm435_vm1, %v1668_v8 }
  0xe0   : > { %v385_v23 = vpop.permute.xlu0 %384 }
  0xe1   : > { %vm424_vm14 = vcmp.eq.s32.totalorder %v1899_v5, %v385_v23  ;;  %vm425_vm15 = vcmp.eq.s32.totalorder %v1901_v6, %v385_v23  ;;  %v510_v5 = vld [vmem:[#allocation2 + $0x50] sm:$0xff] }
  0xe2   : > { %1295 = vmatmul.msk.f32.gmra.mxu0 %vm418_vm2, %v1668_v8  ;;  %1304 = vmatmul.msk.f32.gmra.mxu2 %vm436_vm3, %v1668_v8 }
  0xe3   : > { %1311 = vmatmul.msk.f32.gmra.mxu1 %vm419_vm4, %v1668_v8  ;;  %1320 = vmatmul.msk.f32.gmra.mxu3 %vm437_vm5, %v1668_v8 }
  0xea   : > { %1296 = vmatmul.msk.f32.gmra.mxu0 %vm420_vm6, %v1668_v8  ;;  %1305 = vmatmul.msk.f32.gmra.mxu2 %vm438_vm7, %v1668_v8 }
  0xeb   : > { %1312 = vmatmul.msk.f32.gmra.mxu1 %vm421_vm8, %v1668_v8  ;;  %1321 = vmatmul.msk.f32.gmra.mxu3 %vm439_vm9, %v1668_v8 }
  0xf2   : > { %1297 = vmatmul.msk.f32.gmra.mxu0 %vm422_vm11, %v1668_v8  ;;  %1306 = vmatmul.msk.f32.gmra.mxu2 %vm440_vm10, %v1668_v8 }
  0xf3   : > { %1313 = vmatmul.msk.f32.gmra.mxu1 %vm423_vm13, %v1668_v8  ;;  %1322 = vmatmul.msk.f32.gmra.mxu3 %vm441_vm12, %v1668_v8 }
  0xfa   : > { %1298 = vmatmul.msk.f32.gmra.mxu0 %vm424_vm14, %v1668_v8 }
  0xfb   : > { %1314 = vmatmul.msk.f32.gmra.mxu1 %vm425_vm15, %v1668_v8 }
 0x13d   : > { %v595_v24 = vpop.f32.mrf.mxu2  ;;  %v660_v26 = vpop.f32.mrf.mxu3 }
 0x13e   : > { %v661_v27 = vadd.f32 %v660_v26, %v595_v24 }
 0x13f   : > { %v571_v28 = vpop.f32.mrf.mxu0 }
 0x140   : > { %v692_v29 = vadd.f32 %v661_v27, %v514_v25  ;;  %v636_v31 = vpop.f32.mrf.mxu1  ;;  %v512_v25 = vld [vmem:[#allocation2 + $0x8] sm:$0xff] }
 0x141   : > { %v637_v32 = vadd.f32 %v636_v31, %v571_v28  ;;  %v521_v31 = vld [vmem:[#allocation2 + $0x28] sm:$0xff] }
 0x142   : > { %708 = vst [vmem:[#allocation2 + $0x40] sm:$0xff] %v692_v29 }
 0x143   : > { %v684_v33 = vadd.f32 %v637_v32, %v506_v30 }
 0x145   : > { %700 = vst [vmem:[#allocation2 + $0x30] sm:$0xff] %v684_v33  ;;  %v598_v34 = vpop.f32.mrf.mxu2 }
 0x146   : > { %v663_v36 = vpop.f32.mrf.mxu3 }
 0x147   : > { %v664_v37 = vadd.f32 %v663_v36, %v598_v34  ;;  %v574_v38 = vpop.f32.mrf.mxu0 }
 0x148   : > { %v639_v40 = vpop.f32.mrf.mxu1 }
 0x149   : > { %v693_v41 = vadd.f32 %v664_v37, %v515_v35  ;;  %v640_v42 = vadd.f32 %v639_v40, %v574_v38  ;;  %v513_v35 = vld [vmem:[#allocation2 + $0x48] sm:$0xff] }
 0x14b   : > { %709 = vst [vmem:[#allocation2 + $0x20] sm:$0xff] %v693_v41  ;;  %v685_v43 = vadd.f32 %v640_v42, %v507_v39 }
 0x14d   : > { %701 = vst [vmem:[#allocation2] sm:$0xff] %v685_v43  ;;  %v601_v44 = vpop.f32.mrf.mxu2 }
 0x14e   : > { %v666_v46 = vpop.f32.mrf.mxu3 }
 0x14f   : > { %v667_v47 = vadd.f32 %v666_v46, %v601_v44  ;;  %v577_v48 = vpop.f32.mrf.mxu0 }
 0x150   : > { %v642_v50 = vpop.f32.mrf.mxu1 }
 0x151   : > { %v694_v51 = vadd.f32 %v667_v47, %v516_v45  ;;  %v643_v52 = vadd.f32 %v642_v50, %v577_v48 }
 0x153   : > { %710 = vst [vmem:[#allocation2 + $0x10] sm:$0xff] %v694_v51  ;;  %v686_v53 = vadd.f32 %v643_v52, %v508_v49 }
 0x155   : > { %702 = vst [vmem:[#allocation2 + $0x58] sm:$0xff] %v686_v53  ;;  %v604_v54 = vpop.f32.mrf.mxu2 }
 0x156   : > { %v669_v56 = vpop.f32.mrf.mxu3 }
 0x157   : > { %v670_v57 = vadd.f32 %v669_v56, %v604_v54  ;;  %v580_v58 = vpop.f32.mrf.mxu0 }
 0x158   : > { %v645_v60 = vpop.f32.mrf.mxu1 }
 0x159   : > { %v695_v61 = vadd.f32 %v670_v57, %v517_v55  ;;  %v646_v62 = vadd.f32 %v645_v60, %v580_v58 }
 0x15b   : > { %711 = vst [vmem:[#allocation2 + $0x38] sm:$0xff] %v695_v61  ;;  %v687_v63 = vadd.f32 %v646_v62, %v509_v59 }
 0x15d   : > { %703 = vst [vmem:[#allocation2 + $0x18] sm:$0xff] %v687_v63  ;;  %v607_v0 = vpop.f32.mrf.mxu2 }
 0x15e   : > { %v672_v2 = vpop.f32.mrf.mxu3 }
 0x15f   : > { %v673_v3 = vadd.f32 %v672_v2, %v607_v0  ;;  %v583_v4 = vpop.f32.mrf.mxu0 }
 0x160   : > { %v648_v6 = vpop.f32.mrf.mxu1 }
 0x161   : > { %v696_v7 = vadd.f32 %v673_v3, %v518_v1  ;;  %v649_v8 = vadd.f32 %v648_v6, %v583_v4 }
 0x163   : > { %712 = vst [vmem:[#allocation2 + $0x60] sm:$0xff] %v696_v7  ;;  %v688_v9 = vadd.f32 %v649_v8, %v510_v5 }
 0x165   : > { %704 = vst [vmem:[#allocation2 + $0x50] sm:$0xff] %v688_v9  ;;  %v610_v10 = vpop.f32.mrf.mxu2 }
 0x166   : > { %v675_v12 = vpop.f32.mrf.mxu3 }
 0x167   : > { %v676_v13 = vadd.f32 %v675_v12, %v610_v10  ;;  %v586_v14 = vpop.f32.mrf.mxu0 }
 0x168   : > { %v651_v16 = vpop.f32.mrf.mxu1 }
 0x169   : > { %v697_v17 = vadd.f32 %v676_v13, %v519_v11  ;;  %v652_v18 = vadd.f32 %v651_v16, %v586_v14 }
 0x16b   : > { %713 = vst [vmem:[#allocation2 + $0x70] sm:$0xff] %v697_v17  ;;  %v689_v19 = vadd.f32 %v652_v18, %v511_v15 }
 0x16d   : > { %705 = vst [vmem:[#allocation2 + $0x68] sm:$0xff] %v689_v19  ;;  %v613_v20 = vpop.f32.mrf.mxu2 }
 0x16e   : > { %v678_v22 = vpop.f32.mrf.mxu3 }
 0x16f   : > { %v679_v23 = vadd.f32 %v678_v22, %v613_v20  ;;  %v589_v24 = vpop.f32.mrf.mxu0 }
 0x170   : > { %v654_v26 = vpop.f32.mrf.mxu1 }
 0x171   : > { %v698_v27 = vadd.f32 %v679_v23, %v520_v21  ;;  %v655_v28 = vadd.f32 %v654_v26, %v589_v24 }
 0x173   : > { %714 = vst [vmem:[#allocation2 + $0x78] sm:$0xff] %v698_v27  ;;  %v690_v29 = vadd.f32 %v655_v28, %v512_v25 }
 0x175   : > { %706 = vst [vmem:[#allocation2 + $0x8] sm:$0xff] %v690_v29  ;;  %v616_v30 = vpop.f32.mrf.mxu2 }
 0x176   : > { %v681_v32 = vpop.f32.mrf.mxu3 }
 0x177   : > { %v682_v33 = vadd.f32 %v681_v32, %v616_v30  ;;  %v592_v34 = vpop.f32.mrf.mxu0 }
 0x178   : > { %v657_v36 = vpop.f32.mrf.mxu1 }
 0x179   : > { %v699_v37 = vadd.f32 %v682_v33, %v521_v31  ;;  %v658_v38 = vadd.f32 %v657_v36, %v592_v34  ;;  %719 = sbr.rel (%p1323_p9) target bundleno = 699 (0x2bb), region = 52 }
 0x17b   : > { %715 = vst [vmem:[#allocation2 + $0x28] sm:$0xff] %v699_v37  ;;  %v691_v39 = vadd.f32 %v658_v38, %v513_v35 }
 0x17d   : > { %707 = vst [vmem:[#allocation2 + $0x48] sm:$0xff] %v691_v39 }
 0x17e   : > { %v1968_v40 = vld [vmem:[#allocation2 + $0x50] sm:$0xff]  ;;  %v722_v41 = vld [vmem:[#allocation2 + $0x58] sm:$0xff]  ;;  %v725_v43 = vld [vmem:[#allocation2 + $0x68] sm:$0xff]  ;;  %v1669_v56 = vmov 128.0  }
 0x17f   : > { %v720_v42 = vld [vmem:[#allocation2 + $0x30] sm:$0xff]  ;;  %744 = vadd.xlane.f32.xlu2 %v1968_v40  ;;  %740 = vadd.xlane.f32.xlu1 %v722_v41  ;;  %v723_v44 = vld [vmem:[#allocation2 + $0x18] sm:$0xff]  ;;  %v721_v45 = vld [vmem:[#allocation2] sm:$0xff]  ;;  %1477 = vrcp.f32 %v1669_v56 }
 0x180   : > { %736 = vadd.xlane.f32.xlu0 %v720_v42  ;;  %v728_v46 = vld [vmem:[#allocation2 + $0x40] sm:$0xff]  ;;  %v726_v48 = vld [vmem:[#allocation2 + $0x8] sm:$0xff]  ;;  %v1974_v49 = vld [vmem:[#allocation2 + $0x38] sm:$0xff] }
 0x181   : > { %v1976_v50 = vld [vmem:[#allocation2 + $0x10] sm:$0xff]  ;;  %v1978_v51 = vld [vmem:[#allocation2 + $0x20] sm:$0xff]  ;;  %v1983_v52 = vld [vmem:[#allocation2 + $0x78] sm:$0xff] }
 0x182   : > { %v1985_v53 = vld [vmem:[#allocation2 + $0x70] sm:$0xff]  ;;  %v1987_v54 = vld [vmem:[#allocation2 + $0x60] sm:$0xff]  ;;  %v1992_v55 = vld [vmem:[#allocation2 + $0x28] sm:$0xff] }
 0x184   : > { %v1971_v47 = vld [vmem:[#allocation2 + $0x48] sm:$0xff] }
 0x185   : > { %v1478_v57 = vpop.eup %1477 }
 0x186   : > { %v769_v58 = vmul.f32 128.0, %v1478_v57  ;;  %vm773_vm0 = vweird.f32 %v1478_v57 }
 0x187   : > { %746 = vadd.xlane.f32.xlu2 %v725_v43  ;;  %742 = vadd.xlane.f32.xlu1 %v723_v44 }
 0x188   : > { %738 = vadd.xlane.f32.xlu0 %v721_v45  ;;  %v770_v59 = vsub.f32 1.0, %v769_v58 }
 0x18a   : > { %v771_v60 = vmul.f32 %v1478_v57, %v770_v59 }
 0x18c   : > { %v772_v61 = vadd.f32 %v1478_v57, %v771_v60 }
 0x18e   : > { %v1995_v62 = vsel %vm773_vm0, %v1478_v57, %v772_v61 }
 0x18f   : > { %752 = vadd.xlane.f32.xlu2 %v728_v46  ;;  %750 = vadd.xlane.f32.xlu1 %v1971_v47 }
 0x190   : > { %748 = vadd.xlane.f32.xlu0 %v726_v48 }
 0x197   : > { %758 = vadd.xlane.f32.xlu2 %v1974_v49  ;;  %756 = vadd.xlane.f32.xlu1 %v1976_v50 }
 0x198   : > { %754 = vadd.xlane.f32.xlu0 %v1978_v51 }
 0x19f   : > { %764 = vadd.xlane.f32.xlu2 %v1983_v52  ;;  %762 = vadd.xlane.f32.xlu1 %v1985_v53 }
 0x1a0   : > { %760 = vadd.xlane.f32.xlu0 %v1987_v54 }
 0x1a8   : > { %766 = vadd.xlane.f32.xlu0 %v1992_v55 }
 0x1f2   : > { %v745_v63 = vpop.xlane.xlu2 %744  ;;  %v741_v0 = vpop.xlane.xlu1 %740 }
 0x1f3   : > { %v777_v1 = vmul.f32 %v1995_v62, %v741_v0  ;;  %v737_v2 = vpop.xlane.xlu0 %736  ;;  %v779_v19 = vmul.f32 %v1995_v62, %v745_v63 }
 0x1f4   : > { %v775_v3 = vmul.f32 %v1995_v62, %v737_v2 }
 0x1f5   : > { %v1999_v4 = vsub.f32 %v722_v41, %v777_v1  ;;  %v2025_v25 = vsub.f32 %v1968_v40, %v779_v19 }
 0x1f6   : > { %v2001_v5 = vsub.f32 %v720_v42, %v775_v3 }
 0x1f7   : > { %v809_v6 = vmul.f32 %v1999_v4, %v1999_v4  ;;  %v811_v31 = vmul.f32 %v2025_v25, %v2025_v25 }
 0x1f8   : > { %v807_v7 = vmul.f32 %v2001_v5, %v2001_v5 }
 0x1f9   : > { %827 = vadd.xlane.f32.xlu0 %v809_v6 }
 0x1fa   : > { %823 = vadd.xlane.f32.xlu1 %v807_v7  ;;  %v747_v8 = vpop.xlane.xlu2 %746  ;;  %v743_v9 = vpop.xlane.xlu1 %742 }
 0x1fb   : > { %v780_v10 = vmul.f32 %v1995_v62, %v747_v8  ;;  %v778_v11 = vmul.f32 %v1995_v62, %v743_v9  ;;  %v739_v12 = vpop.xlane.xlu0 %738 }
 0x1fc   : > { %v776_v13 = vmul.f32 %v1995_v62, %v739_v12 }
 0x1fd   : > { %v2010_v14 = vsub.f32 %v725_v43, %v780_v10  ;;  %v2012_v15 = vsub.f32 %v723_v44, %v778_v11 }
 0x1fe   : > { %v2014_v16 = vsub.f32 %v721_v45, %v776_v13 }
 0x1ff   : > { %v812_v17 = vmul.f32 %v2010_v14, %v2010_v14  ;;  %v810_v18 = vmul.f32 %v2012_v15, %v2012_v15 }
 0x200   : > { %v808_v20 = vmul.f32 %v2014_v16, %v2014_v16 }
 0x201   : > { %833 = vadd.xlane.f32.xlu0 %v812_v17 }
 0x202   : > { %829 = vadd.xlane.f32.xlu1 %v810_v18  ;;  %825 = vadd.xlane.f32.xlu2 %v808_v20  ;;  %v753_v21 = vpop.xlane.xlu2 %752  ;;  %v751_v22 = vpop.xlane.xlu1 %750 }
 0x203   : > { %v783_v23 = vmul.f32 %v1995_v62, %v753_v21  ;;  %v749_v24 = vpop.xlane.xlu0 %748  ;;  %v782_v29 = vmul.f32 %v1995_v62, %v751_v22 }
 0x204   : > { %v781_v26 = vmul.f32 %v1995_v62, %v749_v24 }
 0x205   : > { %v2028_v27 = vsub.f32 %v728_v46, %v783_v23  ;;  %v2040_v34 = vsub.f32 %v1971_v47, %v782_v29 }
 0x206   : > { %v2030_v28 = vsub.f32 %v726_v48, %v781_v26 }
 0x207   : > { %v815_v30 = vmul.f32 %v2028_v27, %v2028_v27  ;;  %v814_v41 = vmul.f32 %v2040_v34, %v2040_v34 }
 0x208   : > { %v813_v32 = vmul.f32 %v2030_v28, %v2030_v28 }
 0x209   : > { %839 = vadd.xlane.f32.xlu0 %v815_v30 }
 0x20a   : > { %831 = vadd.xlane.f32.xlu2 %v811_v31  ;;  %835 = vadd.xlane.f32.xlu1 %v813_v32  ;;  %v759_v33 = vpop.xlane.xlu2 %758  ;;  %v757_v35 = vpop.xlane.xlu1 %756 }
 0x20b   : > { %v786_v36 = vmul.f32 %v1995_v62, %v759_v33  ;;  %v755_v37 = vpop.xlane.xlu0 %754  ;;  %v785_v42 = vmul.f32 %v1995_v62, %v757_v35 }
 0x20c   : > { %v784_v38 = vmul.f32 %v1995_v62, %v755_v37 }
 0x20d   : > { %v2045_v39 = vsub.f32 %v1974_v49, %v786_v36  ;;  %v2058_v46 = vsub.f32 %v1976_v50, %v785_v42 }
 0x20e   : > { %v2048_v40 = vsub.f32 %v1978_v51, %v784_v38 }
 0x20f   : > { %v818_v43 = vmul.f32 %v2045_v39, %v2045_v39  ;;  %v817_v58 = vmul.f32 %v2058_v46, %v2058_v46 }
 0x210   : > { %v816_v44 = vmul.f32 %v2048_v40, %v2048_v40 }
 0x211   : > { %845 = vadd.xlane.f32.xlu0 %v818_v43 }
 0x212   : > { %837 = vadd.xlane.f32.xlu2 %v814_v41  ;;  %841 = vadd.xlane.f32.xlu1 %v816_v44  ;;  %v765_v45 = vpop.xlane.xlu2 %764  ;;  %v763_v49 = vpop.xlane.xlu1 %762 }
 0x213   : > { %v789_v47 = vmul.f32 %v1995_v62, %v765_v45  ;;  %v761_v48 = vpop.xlane.xlu0 %760  ;;  %v788_v59 = vmul.f32 %v1995_v62, %v763_v49  ;;  %v2116_v49 = vld [vmem:[%s2373_s3] ss:$0 sm:$0xff] }
 0x214   : > { %v787_v51 = vmul.f32 %v1995_v62, %v761_v48 }
 0x215   : > { %v2063_v56 = vsub.f32 %v1983_v52, %v789_v47  ;;  %v2076_v52 = vsub.f32 %v1985_v53, %v788_v59 }
 0x216   : > { %v2066_v57 = vsub.f32 %v1987_v54, %v787_v51 }
 0x217   : > { %v821_v50 = vmul.f32 %v2063_v56, %v2063_v56  ;;  %v820_v0 = vmul.f32 %v2076_v52, %v2076_v52 }
 0x218   : > { %v819_v60 = vmul.f32 %v2066_v57, %v2066_v57 }
 0x219   : > { %851 = vadd.xlane.f32.xlu0 %v821_v50 }
 0x21a   : > { %843 = vadd.xlane.f32.xlu2 %v817_v58  ;;  %847 = vadd.xlane.f32.xlu1 %v819_v60 }
 0x21b   : > { %v767_v61 = vpop.xlane.xlu0 %766 }
 0x21c   : > { %v790_v54 = vmul.f32 %v1995_v62, %v767_v61 }
 0x21e   : > { %v2080_v63 = vsub.f32 %v1992_v55, %v790_v54 }
 0x220   : > { %v822_v1 = vmul.f32 %v2080_v63, %v2080_v63 }
 0x222   : > { %849 = vadd.xlane.f32.xlu2 %v820_v0  ;;  %853 = vadd.xlane.f32.xlu1 %v822_v1  ;;  %v2131_v0 = vld [vmem:[%s2374_s4] ss:$0 sm:$0xff] }
 0x26c   : > { %v828_v2 = vpop.xlane.xlu0 %827 }
 0x26d   : > { %v824_v3 = vpop.xlane.xlu1 %823  ;;  %v857_v6 = vmul.f32 %v828_v2, %v1995_v62 }
 0x26e   : > { %v855_v53 = vmul.f32 %v824_v3, %v1995_v62 }
 0x26f   : > { %v873_v7 = vadd.f32 1e-12, %v857_v6 }
 0x270   : > { %v871_v8 = vadd.f32 1e-12, %v855_v53 }
 0x271   : > { %1479 = vrsqrt.f32 %v873_v7  ;;  %vm913_vm3 = vweird.f32 %v873_v7 }
 0x272   : > { %1481 = vrsqrt.f32 %v871_v8  ;;  %vm893_vm4 = vweird.f32 %v871_v8 }
 0x274   : > { %v834_v55 = vpop.xlane.xlu0 %833 }
 0x275   : > { %v830_v9 = vpop.xlane.xlu1 %829  ;;  %v826_v10 = vpop.xlane.xlu2 %825  ;;  %v860_v11 = vmul.f32 %v834_v55, %v1995_v62 }
 0x276   : > { %v858_v12 = vmul.f32 %v830_v9, %v1995_v62  ;;  %v856_v13 = vmul.f32 %v826_v10, %v1995_v62 }
 0x277   : > { %v1480_v17 = vpop.eup %1479  ;;  %v2091_v18 = vadd.f32 1e-12, %v860_v11 }
 0x278   : > { %v1482_v19 = vpop.eup %1481  ;;  %v908_v20 = vmul.f32 %v1480_v17, %v873_v7  ;;  %v2093_v21 = vadd.f32 1e-12, %v858_v12  ;;  %v2095_v22 = vadd.f32 1e-12, %v856_v13  ;;  %vm914_vm1 = vweird.f32 %v1480_v17 }
 0x279   : > { %v888_v23 = vmul.f32 %v1482_v19, %v871_v8  ;;  %1483 = vrsqrt.f32 %v2091_v18  ;;  %vm894_vm2 = vweird.f32 %v1482_v19  ;;  %vm915_vm5 = vmor %vm913_vm3, %vm914_vm1  ;;  %vm943_vm7 = vweird.f32 %v2091_v18 }
 0x27a   : > { %v909_v24 = vmul.f32 %v1480_v17, %v908_v20  ;;  %1485 = vrsqrt.f32 %v2093_v21  ;;  %vm895_vm6 = vmor %vm893_vm4, %vm894_vm2  ;;  %vm923_vm11 = vweird.f32 %v2093_v21  ;;  %vm903_vm12 = vweird.f32 %v2095_v22 }
 0x27b   : > { %v889_v26 = vmul.f32 %v1482_v19, %v888_v23  ;;  %1487 = vrsqrt.f32 %v2095_v22 }
 0x27c   : > { %v910_v29 = vmul.f32 0.5, %v909_v24  ;;  %v840_v30 = vpop.xlane.xlu0 %839 }
 0x27d   : > { %v890_v31 = vmul.f32 0.5, %v889_v26  ;;  %v832_v32 = vpop.xlane.xlu2 %831  ;;  %v836_v33 = vpop.xlane.xlu1 %835  ;;  %v863_v38 = vmul.f32 %v840_v30, %v1995_v62 }
 0x27e   : > { %v911_v35 = vsub.f32 1.5, %v910_v29  ;;  %v859_v36 = vmul.f32 %v832_v32, %v1995_v62  ;;  %v861_v37 = vmul.f32 %v836_v33, %v1995_v62 }
 0x27f   : > { %v2103_v41 = vpop.eup %1483  ;;  %v891_v42 = vsub.f32 1.5, %v890_v31  ;;  %v2126_v54 = vadd.f32 1e-12, %v863_v38 }
 0x280   : > { %v2105_v43 = vpop.eup %1485  ;;  %v912_v44 = vmul.f32 %v1480_v17, %v911_v35  ;;  %v938_v45 = vmul.f32 %v2103_v41, %v2091_v18  ;;  %v2109_v47 = vadd.f32 1e-12, %v859_v36  ;;  %v2121_v59 = vadd.f32 1e-12, %v861_v37 }
 0x281   : > { %v2111_v48 = vpop.eup %1487  ;;  %v892_v51 = vmul.f32 %v1482_v19, %v891_v42  ;;  %v918_v58 = vmul.f32 %v2105_v43, %v2093_v21  ;;  %vm944_vm8 = vweird.f32 %v2103_v41  ;;  %vm924_vm9 = vweird.f32 %v2105_v43 }
 0x282   : > { %v916_v50 = vsel %vm915_vm5, %v1480_v17, %v912_v44  ;;  %v898_v60 = vmul.f32 %v2111_v48, %v2095_v22  ;;  %v939_v61 = vmul.f32 %v2103_v41, %v938_v45  ;;  %1489 = vrsqrt.f32 %v2109_v47  ;;  %vm945_vm13 = vmor %vm943_vm7, %vm944_vm8 }
 0x283   : > { %v896_v1 = vsel %vm895_vm6, %v1482_v19, %v892_v51  ;;  %v1049_v2 = vmul.f32 %v916_v50, %v1999_v4  ;;  %v919_v3 = vmul.f32 %v2105_v43, %v918_v58  ;;  %1491 = vrsqrt.f32 %v2121_v59  ;;  %vm925_vm14 = vmor %vm923_vm11, %vm924_vm9 }
 0x284   : > { %v1047_v6 = vmul.f32 %v896_v1, %v2001_v5  ;;  %v899_v53 = vmul.f32 %v2111_v48, %v898_v60  ;;  %v940_v7 = vmul.f32 0.5, %v939_v61  ;;  %1493 = vrsqrt.f32 %v2126_v54  ;;  %v846_v24 = vpop.xlane.xlu0 %845 }
 0x285   : > { %v1069_v8 = vmul.f32 %v2116_v49, %v1049_v2  ;;  %v920_v55 = vmul.f32 0.5, %v919_v3  ;;  %v838_v9 = vpop.xlane.xlu2 %837  ;;  %v842_v17 = vpop.xlane.xlu1 %841  ;;  %vm904_vm10 = vweird.f32 %v2111_v48  ;;  %vm933_vm15 = vweird.f32 %v2109_v47 }
 0x286   : > { %v1067_v4 = vmul.f32 %v2116_v49, %v1047_v6  ;;  %v900_v10 = vmul.f32 0.5, %v899_v53  ;;  %v941_v11 = vsub.f32 1.5, %v940_v7  ;;  %v862_v13 = vmul.f32 %v838_v9, %v1995_v62  ;;  %vm905_vm0 = vmor %vm903_vm12, %vm904_vm10 }
 0x287   : > { %v1089_v5 = vadd.f32 %v2131_v0, %v1069_v8  ;;  %v921_v12 = vsub.f32 1.5, %v920_v55  ;;  %v864_v22 = vmul.f32 %v842_v17, %v1995_v62  ;;  %v866_v36 = vmul.f32 %v846_v24, %v1995_v62 }
 0x288   : > { %v1087_v19 = vadd.f32 %v2131_v0, %v1067_v4  ;;  %v901_v20 = vsub.f32 1.5, %v900_v10  ;;  %v942_v23 = vmul.f32 %v2103_v41, %v941_v11  ;;  %v2150_v26 = vpop.eup %1489  ;;  %v2160_v30 = vadd.f32 1e-12, %v862_v13 }
 0x289   : > { %1105 = vst [vmem:[%s1831_s14 + $0x10] sm:$0xff] %v1089_v5  ;;  %v922_v29 = vmul.f32 %v2105_v43, %v921_v12  ;;  %v928_v21 = vmul.f32 %v2150_v26, %v2109_v47  ;;  %v2171_v33 = vpop.eup %1491  ;;  %vm953_vm1 = vweird.f32 %v2121_v59  ;;  %vm934_vm2 = vweird.f32 %v2150_v26 }
 0x28a   : > { %1103 = vst [vmem:[%s1831_s14] sm:$0xff] %v1087_v19  ;;  %v902_v31 = vmul.f32 %v2111_v48, %v901_v20  ;;  %v946_v32 = vsel %vm945_vm13, %v2103_v41, %v942_v23  ;;  %1495 = vrsqrt.f32 %v2160_v30  ;;  %v1494_v37 = vpop.eup %1493  ;;  %v948_v44 = vmul.f32 %v2171_v33, %v2121_v59  ;;  %vm935_vm5 = vmor %vm933_vm15, %vm934_vm2 }
 0x28b   : > { %v926_v18 = vsel %vm925_vm14, %v2105_v43, %v922_v29  ;;  %v1052_v35 = vmul.f32 %v946_v32, %v2010_v14  ;;  %v929_v42 = vmul.f32 %v2150_v26, %v928_v21  ;;  %v968_v14 = vmul.f32 %v1494_v37, %v2126_v54 }
 0x28c   : > { %v1050_v38 = vmul.f32 %v926_v18, %v2012_v15  ;;  %v906_v41 = vsel %vm905_vm0, %v2111_v48, %v902_v31  ;;  %v949_v48 = vmul.f32 %v2171_v33, %v948_v44  ;;  %v2193_v61 = vadd.f32 1e-12, %v864_v22  ;;  %v852_v12 = vpop.xlane.xlu0 %851 }
 0x28d   : > { %v1048_v43 = vmul.f32 %v906_v41, %v2014_v16  ;;  %v1072_v45 = vmul.f32 %v2116_v49, %v1052_v35  ;;  %v844_v51 = vpop.xlane.xlu2 %843  ;;  %v930_v15 = vmul.f32 0.5, %v929_v42  ;;  %v969_v60 = vmul.f32 %v1494_v37, %v968_v14  ;;  %v848_v55 = vpop.xlane.xlu1 %847 }
 0x28e   : > { %v1070_v58 = vmul.f32 %v2116_v49, %v1050_v38  ;;  %v950_v3 = vmul.f32 0.5, %v949_v48  ;;  %v2196_v6 = vadd.f32 1e-12, %v866_v36  ;;  %vm973_vm3 = vweird.f32 %v2126_v54 }
 0x28f   : > { %v1068_v50 = vmul.f32 %v2116_v49, %v1048_v43  ;;  %v1092_v16 = vadd.f32 %v2131_v0, %v1072_v45  ;;  %v931_v2 = vsub.f32 1.5, %v930_v15  ;;  %v970_v8 = vmul.f32 0.5, %v969_v60 }
 0x290   : > { %v1090_v1 = vadd.f32 %v2131_v0, %v1070_v58  ;;  %v2198_v53 = vpop.eup %1495  ;;  %1497 = vrsqrt.f32 %v2193_v61  ;;  %v951_v4 = vsub.f32 1.5, %v950_v3  ;;  %vm954_vm4 = vweird.f32 %v2171_v33 }
 0x291   : > { %v1088_v7 = vadd.f32 %v2131_v0, %v1068_v50  ;;  %1108 = vst [vmem:[%s1831_s14 + $0x28] sm:$0xff] %v1092_v16  ;;  %v932_v9 = vmul.f32 %v2150_v26, %v931_v2  ;;  %v958_v10 = vmul.f32 %v2198_v53, %v2160_v30  ;;  %v971_v11 = vsub.f32 1.5, %v970_v8  ;;  %vm955_vm7 = vmor %vm953_vm1, %vm954_vm4 }
 0x292   : > { %1106 = vst [vmem:[%s1831_s14 + $0x18] sm:$0xff] %v1090_v1  ;;  %vm974_vm6 = vweird.f32 %v1494_v37  ;;  %1499 = vrsqrt.f32 %v2196_v6  ;;  %v865_v5 = vmul.f32 %v844_v51, %v1995_v62  ;;  %v952_v17 = vmul.f32 %v2171_v33, %v951_v4 }
 0x293   : > { %1104 = vst [vmem:[%s1831_s14 + $0x8] sm:$0xff] %v1088_v7  ;;  %v936_v13 = vsel %vm935_vm5, %v2150_v26, %v932_v9  ;;  %v959_v19 = vmul.f32 %v2198_v53, %v958_v10  ;;  %v867_v20 = vmul.f32 %v848_v55, %v1995_v62  ;;  %v972_v47 = vmul.f32 %v1494_v37, %v971_v11  ;;  %vm975_vm9 = vmor %vm973_vm3, %vm974_vm6 }
 0x294   : > { %v1051_v23 = vmul.f32 %v936_v13, %v2025_v25  ;;  %vm963_vm8 = vweird.f32 %v2160_v30  ;;  %v2224_v24 = vadd.f32 1e-12, %v865_v5  ;;  %v956_v29 = vsel %vm955_vm7, %v2171_v33, %v952_v17 }
 0x295   : > { %v960_v26 = vmul.f32 0.5, %v959_v19  ;;  %v2229_v31 = vadd.f32 1e-12, %v867_v20  ;;  %v869_v32 = vmul.f32 %v852_v12, %v1995_v62  ;;  %v850_v21 = vpop.xlane.xlu2 %849  ;;  %v1053_v22 = vmul.f32 %v956_v29, %v2030_v28  ;;  %v854_v48 = vpop.xlane.xlu1 %853 }
 0x296   : > { %v1498_v25 = vpop.eup %1497  ;;  %v1071_v59 = vmul.f32 %v2116_v49, %v1051_v23  ;;  %v976_v18 = vsel %vm975_vm9, %v1494_v37, %v972_v47  ;;  %1501 = vrsqrt.f32 %v2224_v24  ;;  %vm964_vm10 = vweird.f32 %v2198_v53 }
 0x297   : > { %v1055_v33 = vmul.f32 %v976_v18, %v2028_v27  ;;  %v961_v35 = vsub.f32 1.5, %v960_v26  ;;  %v978_v54 = vmul.f32 %v1498_v25, %v2193_v61  ;;  %v1073_v41 = vmul.f32 %v2116_v49, %v1053_v22  ;;  %vm965_vm11 = vmor %vm963_vm8, %vm964_vm10 }
 0x298   : > { %v1500_v36 = vpop.eup %1499  ;;  %v1091_v38 = vadd.f32 %v2131_v0, %v1071_v59  ;;  %1503 = vrsqrt.f32 %v2229_v31  ;;  %v868_v28 = vmul.f32 %v850_v21, %v1995_v62  ;;  %vm983_vm12 = vweird.f32 %v2193_v61 }
 0x299   : > { %v1075_v37 = vmul.f32 %v2116_v49, %v1055_v33  ;;  %v962_v42 = vmul.f32 %v2198_v53, %v961_v35  ;;  %v979_v27 = vmul.f32 %v1498_v25, %v978_v54  ;;  %v998_v44 = vmul.f32 %v1500_v36, %v2196_v6 }
 0x29a   : > { %1107 = vst [vmem:[%s1831_s14 + $0x20] sm:$0xff] %v1091_v38  ;;  %v1093_v43 = vadd.f32 %v2131_v0, %v1073_v41  ;;  %v2250_v45 = vadd.f32 1e-12, %v869_v32  ;;  %vm1003_vm13 = vweird.f32 %v2196_v6  ;;  %v2258_v30 = vadd.f32 1e-12, %v868_v28 }
 0x29b   : > { %v1095_v14 = vadd.f32 %v2131_v0, %v1075_v37  ;;  %v966_v51 = vsel %vm965_vm11, %v2198_v53, %v962_v42  ;;  %v980_v58 = vmul.f32 0.5, %v979_v27  ;;  %v999_v15 = vmul.f32 %v1500_v36, %v998_v44 }
 0x29c   : > { %v1502_v50 = vpop.eup %1501  ;;  %1109 = vst [vmem:[%s1831_s14 + $0x30] sm:$0xff] %v1093_v43  ;;  %v1054_v16 = vmul.f32 %v966_v51, %v2040_v34  ;;  %1505 = vrsqrt.f32 %v2250_v45  ;;  %vm984_vm14 = vweird.f32 %v1498_v25  ;;  %vm1004_vm15 = vweird.f32 %v1500_v36 }
 0x29d   : > { %1111 = vst [vmem:[%s1831_s14 + $0x40] sm:$0xff] %v1095_v14  ;;  %v981_v60 = vsub.f32 1.5, %v980_v58  ;;  %v1000_v1 = vmul.f32 0.5, %v999_v15  ;;  %v988_v2 = vmul.f32 %v1502_v50, %v2224_v24  ;;  %1507 = vrsqrt.f32 %v2258_v30  ;;  %vm985_vm0 = vmor %vm983_vm12, %vm984_vm14 }
 0x29e   : > { %v1504_v3 = vpop.eup %1503  ;;  %v1074_v53 = vmul.f32 %v2116_v49, %v1054_v16  ;;  %v870_v34 = vmul.f32 %v854_v48, %v1995_v62  ;;  %vm1005_vm1 = vmor %vm1003_vm13, %vm1004_vm15  ;;  %vm994_vm2 = vweird.f32 %v1502_v50  ;;  %vm993_vm3 = vweird.f32 %v2224_v24 }
 0x29f   : > { %v982_v7 = vmul.f32 %v1498_v25, %v981_v60  ;;  %v1001_v8 = vsub.f32 1.5, %v1000_v1  ;;  %v989_v55 = vmul.f32 %v1502_v50, %v988_v2  ;;  %v1008_v9 = vmul.f32 %v1504_v3, %v2229_v31  ;;  %vm995_vm5 = vmor %vm993_vm3, %vm994_vm2 }
 0x2a0   : > { %v1094_v4 = vadd.f32 %v2131_v0, %v1074_v53  ;;  %v2269_v10 = vadd.f32 1e-12, %v870_v34  ;;  %vm1014_vm4 = vweird.f32 %v1504_v3  ;;  %vm1013_vm6 = vweird.f32 %v2229_v31 }
 0x2a1   : > { %v986_v11 = vsel %vm985_vm0, %v1498_v25, %v982_v7  ;;  %v1002_v5 = vmul.f32 %v1500_v36, %v1001_v8  ;;  %v990_v12 = vmul.f32 0.5, %v989_v55  ;;  %v1009_v13 = vmul.f32 %v1504_v3, %v1008_v9  ;;  %vm1015_vm7 = vmor %vm1013_vm6, %vm1014_vm4 }
 0x2a2   : > { %v1506_v17 = vpop.eup %1505  ;;  %1110 = vst [vmem:[%s1831_s14 + $0x38] sm:$0xff] %v1094_v4  ;;  %v1056_v62 = vmul.f32 %v986_v11, %v2048_v40  ;;  %1509 = vrsqrt.f32 %v2269_v10  ;;  %vm1033_vm8 = vweird.f32 %v2250_v45  ;;  %vm1023_vm12 = vweird.f32 %v2258_v30 }
 0x2a3   : > { %v1006_v19 = vsel %vm1005_vm1, %v1500_v36, %v1002_v5  ;;  %v991_v61 = vsub.f32 1.5, %v990_v12  ;;  %v1010_v20 = vmul.f32 0.5, %v1009_v13  ;;  %v1028_v23 = vmul.f32 %v1506_v17, %v2250_v45  ;;  %v1508_v47 = vpop.eup %1507 }
 0x2a4   : > { %v1076_v29 = vmul.f32 %v2116_v49, %v1056_v62  ;;  %v1058_v26 = vmul.f32 %v1006_v19, %v2045_v39  ;;  %v1018_v21 = vmul.f32 %v1508_v47, %v2258_v30  ;;  %vm1034_vm9 = vweird.f32 %v1506_v17 }
 0x2a5   : > { %v992_v40 = vmul.f32 %v1502_v50, %v991_v61  ;;  %v1011_v6 = vsub.f32 1.5, %v1010_v20  ;;  %v1029_v32 = vmul.f32 %v1506_v17, %v1028_v23  ;;  %vm1024_vm10 = vweird.f32 %v1508_v47  ;;  %vm1035_vm11 = vmor %vm1033_vm8, %vm1034_vm9 }
 0x2a6   : > { %v1096_v25 = vadd.f32 %v2131_v0, %v1076_v29  ;;  %v1078_v59 = vmul.f32 %v2116_v49, %v1058_v26  ;;  %v1019_v33 = vmul.f32 %v1508_v47, %v1018_v21  ;;  %vm1025_vm13 = vmor %vm1023_vm12, %vm1024_vm10  ;;  %vm1043_vm15 = vweird.f32 %v2269_v10 }
 0x2a7   : > { %v996_v22 = vsel %vm995_vm5, %v1502_v50, %v992_v40  ;;  %v1012_v39 = vmul.f32 %v1504_v3, %v1011_v6  ;;  %v1030_v18 = vmul.f32 0.5, %v1029_v32 }
 0x2a8   : > { %v1510_v24 = vpop.eup %1509  ;;  %1112 = vst [vmem:[%s1831_s14 + $0x48] sm:$0xff] %v1096_v25  ;;  %v1098_v35 = vadd.f32 %v2131_v0, %v1078_v59  ;;  %v1057_v54 = vmul.f32 %v996_v22, %v2058_v46  ;;  %v1020_v41 = vmul.f32 0.5, %v1019_v33 }
 0x2a9   : > { %v1016_v36 = vsel %vm1015_vm7, %v1504_v3, %v1012_v39  ;;  %v1031_v38 = vsub.f32 1.5, %v1030_v18  ;;  %v1038_v31 = vmul.f32 %v1510_v24, %v2269_v10  ;;  %vm1044_vm14 = vweird.f32 %v1510_v24 }
 0x2aa   : > { %1114 = vst [vmem:[%s1831_s14 + $0x58] sm:$0xff] %v1098_v35  ;;  %v1077_v28 = vmul.f32 %v2116_v49, %v1057_v54  ;;  %v1059_v37 = vmul.f32 %v1016_v36, %v2066_v57  ;;  %v1021_v27 = vsub.f32 1.5, %v1020_v41  ;;  %vm1045_vm0 = vmor %vm1043_vm15, %vm1044_vm14 }
 0x2ab   : > { %v1032_v42 = vmul.f32 %v1506_v17, %v1031_v38  ;;  %v1039_v46 = vmul.f32 %v1510_v24, %v1038_v31 }
 0x2ac   : > { %v1097_v44 = vadd.f32 %v2131_v0, %v1077_v28  ;;  %v1079_v43 = vmul.f32 %v2116_v49, %v1059_v37  ;;  %v1022_v51 = vmul.f32 %v1508_v47, %v1021_v27 }
 0x2ad   : > { %v1036_v14 = vsel %vm1035_vm11, %v1506_v17, %v1032_v42  ;;  %v1040_v58 = vmul.f32 0.5, %v1039_v46 }
 0x2ae   : > { %1113 = vst [vmem:[%s1831_s14 + $0x50] sm:$0xff] %v1097_v44  ;;  %v1099_v57 = vadd.f32 %v2131_v0, %v1079_v43  ;;  %v1061_v15 = vmul.f32 %v1036_v14, %v2063_v56  ;;  %v1026_v48 = vsel %vm1025_vm13, %v1508_v47, %v1022_v51 }
 0x2af   : > { %v1041_v50 = vsub.f32 1.5, %v1040_v58  ;;  %v1060_v16 = vmul.f32 %v1026_v48, %v2076_v52 }
 0x2b0   : > { %1115 = vst [vmem:[%s1831_s14 + $0x60] sm:$0xff] %v1099_v57  ;;  %v1081_v45 = vmul.f32 %v2116_v49, %v1061_v15 }
 0x2b1   : > { %v1042_v60 = vmul.f32 %v1510_v24, %v1041_v50  ;;  %v1080_v1 = vmul.f32 %v2116_v49, %v1060_v16 }
 0x2b2   : > { %v1101_v30 = vadd.f32 %v2131_v0, %v1081_v45 }
 0x2b3   : > { %v1046_v56 = vsel %vm1045_vm0, %v1510_v24, %v1042_v60  ;;  %v1100_v2 = vadd.f32 %v2131_v0, %v1080_v1 }
 0x2b4   : > { %1117 = vst [vmem:[%s1831_s14 + $0x70] sm:$0xff] %v1101_v30  ;;  %v1062_v3 = vmul.f32 %v1046_v56, %v2080_v63 }
 0x2b5   : > { %1116 = vst [vmem:[%s1831_s14 + $0x68] sm:$0xff] %v1100_v2 }
 0x2b6   : > { %v1082_v53 = vmul.f32 %v2116_v49, %v1062_v3 }
 0x2b8   : > { %v1102_v34 = vadd.f32 %v2131_v0, %v1082_v53 }
 0x2ba   : > { %1118 = vst [vmem:[%s1831_s14 + $0x78] sm:$0xff] %v1102_v34 }
 0x2bb PF: > { %s1330_s10 = sshll.u32 %s1651_s25, 7  ;;  %s1132_s11 = sshll.u32 %s1831_s14, 4  ;;  %s1133_s11 = int_to_ptr.vmem [resolvable:$true] %s1132_s11 }
 0x2bc   : > { %s1131_s7 = scalar_lea.hbm %s2375_s5, %s1330_s10  ;;  %s1120_s17 = scalar_lea.sflag [#allocation5], %s286_s6 }
 0x2bd   : > { %s1134_s26 = sshll.u32 %s1131_s7, 4  ;;  %s1561_s25 = scalar_lea.hbm %s2375_s5, 256  ;;  %s1135_s26 = int_to_ptr.hbm [resolvable:$true] %s1134_s26 }
 0x2be   : > { %s1555_s8 = sshra.s32 %s1135_s26, 4  ;;  %s1556_s8 = int_to_ptr.hbm [resolvable:$true] %s1555_s8 }
 0x2bf   : > { %s1557_s12 = scalar_lea.hbm %s1556_s8, 128  ;;  %p1562_p0 = scmp.lt.s32.totalorder %s1556_s8, %s2375_s5 }
 0x2c0   : > { %p1558_p10 = scmp.ne.s32.totalorder %s1556_s8, %s1557_s12  ;;  %p1563_p1 = scmp.lt.s32.totalorder %s1561_s25, %s1557_s12 }
 0x2c2   : > { %p1559_p11 = pnand %p1558_p10, %p1790_p12  ;;  %p1564_p4 = por %p1563_p1, %p1562_p0 }
 0x2c4   : > { %p1560_p13 = pneg %p1559_p11 }
 0x2c6   : > { %p1565_p5 = pnand %p1564_p4, %p1560_p13 }
 0x2c8   : > { %1568 = shalt.err (!%p1565_p5)
}
 0x2c9   : > { %s1670_s6 = smov 128   ;;  %s1671_s14 = smov 8  }
 0x2ca   : > { %1365 = dma.vmem_to_hbm [thread:$0]  (%p1790_p12), %s1133_s11, 2048, %s1135_s26, %s1120_s17, %s1670_s6, %s1670_s6, %s1671_s14  }
 0x2cb PF: > { %p1376_p6 = scmp.ge.s32.totalorder %s1663_s28, 2  ;;  %s1149_s13 = sand.u32 1, %s1623_s18  }
 0x2cc   : > { %s1150_s10 = scalar_lea.sflag [#allocation5], %s1149_s13 }
 0x2cd   : > { %p1372_p7 = pnand %p1376_p6, %p1798_p2 }
 0x2cf   : > { %p1373_p3 = pneg %p1372_p7 }
 0x2d1   : > { %1618 = dma.done.wait (%p1373_p3), %s1150_s10, 2048  }
 0x2d2   : > { %1620 = vsyncadd (%p1373_p3), %s1150_s10, 4294965248  ;;  %s21_s28 = sadd.s32 1, %s1663_s28   ;;  %s2391_s16 = sld [smem:[#allocation9_spill]] }
 0x2d3   : > { %p18_p8 = scmp.ge.s32.totalorder %s21_s28, 6   ;;  %s2392_s23 = sld [smem:[#allocation14_spill]] }
 0x2d4   : > { %s2393_s24 = sld [smem:[#allocation10_spill]]  ;;  %s2397_s18 = smov %s1627_s19 }
 0x2d5   : > { %s2394_s25 = sld [smem:[#allocation11_spill]]  ;;  %s2398_s19 = smov %s1631_s20 }
 0x2d6   : > { %s2395_s26 = sld [smem:[#allocation12_spill]]  ;;  %s2399_s20 = smov %s1788_s15 }
 0x2d7   : > { %s2396_s27 = sld [smem:[#allocation13_spill]]  ;;  %s2400_s21 = smov %s1639_s22 }
 0x2d8   : > { %s2401_s22 = smov %s2391_s16  ;;  %20 = sbr.rel (!%p18_p8) target bundleno = 9 (0x9), region = 99 }
 0x2dd   :  { %1156 = vsyncpa [#allocation4], 1 }
 0x2de   :  { %1158 = vsyncpa [#allocation4 + $0x1], 1 }
 0x2df   :  { %1159 = vsyncpa [#allocation5], 1 }
 0x2e0   :  { %1161 = vsyncpa [#allocation5 + $0x1], 1 }

</bundles_post_ra>
